<compile_context>
chip_gen: v7x
topology: tpu7x:2x2x1
jax: 0.10.0
libtpu: 0.0.40
codegen_flags: <defaults>
</compile_context>

<pallas_src>
import math
import functools

import jax
import jax.numpy as jnp
from jax.experimental import pallas as pl
from jax.experimental.pallas import tpu as pltpu


# ---------------------------------------------------------------------------
# Config (small, consistent with BertConfig shapes)
# ---------------------------------------------------------------------------
BATCH = 2
SEQ = 8
HIDDEN = 32
NUM_HEADS = 4
HEAD_SIZE = HIDDEN // NUM_HEADS
INTERMEDIATE = 64
NUM_LAYERS = 2
LN_EPS = 1e-12


# ---------------------------------------------------------------------------
# Kernel: one (batch block, layer) step of the encoder
# ---------------------------------------------------------------------------
def _layer_norm(x, gamma, beta, eps):
    u = jnp.mean(x, axis=-1, keepdims=True)
    s = jnp.mean((x - u) ** 2, axis=-1, keepdims=True)
    return gamma * ((x - u) * jax.lax.rsqrt(s + eps)) + beta


def _bert_layer_kernel(num_heads, head_size, eps,
                       hs_ref, mask_ref,
                       wqkv_ref, wo_ref, ln1g_ref, ln1b_ref,
                       w1_ref, b1_ref, w2_ref, b2_ref, ln2g_ref, ln2b_ref,
                       out_ref, x_sc):
    layer = pl.program_id(1)

    # Layer 0 of each batch block: load the input hidden states into the
    # resident f32 carry.
    @pl.when(layer == 0)
    def _():
        x_sc[...] = hs_ref[0].astype(jnp.float32)

    x = x_sc[...]                                  # (S, H) carried hidden state
    S, H = x.shape
    nh, d = num_heads, head_size

    # --- self attention ---------------------------------------------------
    # Fused QKV projection: Wq (pre-scaled by 1/sqrt(d)) | Wk | Wv packed as
    # one (H, 3H) matrix -> single lane-dense matmul.
    qkv = jnp.dot(x, wqkv_ref[0], preferred_element_type=jnp.float32)  # (S, 3H)
    q = qkv[:, :H].reshape(S, nh, d).transpose(1, 0, 2)        # (nh, S, d)
    k = qkv[:, H:2 * H].reshape(S, nh, d).transpose(1, 0, 2)   # (nh, S, d)
    v = qkv[:, 2 * H:].reshape(S, nh, d).transpose(1, 0, 2)    # (nh, S, d)

    s = jnp.einsum('nqd,nkd->nqk', q, k,
                   preferred_element_type=jnp.float32)         # (nh, S, S)
    s = s + mask_ref[0][None, :, :]                            # additive mask
    s = s - jnp.max(s, axis=-1, keepdims=True)
    e = jnp.exp(s)
    p = e * pl.reciprocal(jnp.sum(e, axis=-1, keepdims=True), approx=True)

    ctx = jnp.einsum('nqk,nkd->nqd', p, v,
                     preferred_element_type=jnp.float32)       # (nh, S, d)
    ctx = ctx.transpose(1, 0, 2).reshape(S, H)                 # concat heads

    # Output projection + head reduction fused into one (S,H)@(H,H) matmul.
    attn = jnp.dot(ctx, wo_ref[0], preferred_element_type=jnp.float32)

    # --- BertSelfOutput: dense (bias-free per spec) + residual + LN --------
    x1 = _layer_norm(attn + x, ln1g_ref[0], ln1b_ref[0], eps)

    # --- BertIntermediate: dense + ReLU -------------------------------------
    inter = jnp.dot(x1, w1_ref[0], preferred_element_type=jnp.float32) + b1_ref[0]
    inter = jnp.maximum(inter, 0.0)

    # --- BertOutput: dense + residual + LN ----------------------------------
    y = jnp.dot(inter, w2_ref[0], preferred_element_type=jnp.float32) + b2_ref[0]
    x2 = _layer_norm(y + x1, ln2g_ref[0], ln2b_ref[0], eps)

    x_sc[...] = x2                                 # carry to next layer
    out_ref[0] = x2.astype(out_ref.dtype)          # final writeback when b advances


# ---------------------------------------------------------------------------
# Wrapper: parameter packing + pallas_call with (batch, layer) grid
# ---------------------------------------------------------------------------
def bert_encoder_pallas(hidden_states, attn_mask, layer_params):
    """BertEncoder.forward. hidden_states: (B,S,H); attn_mask: additive (B,S,S).

    Returns a tuple (hidden_states,) like the PyTorch module.
    """
    B, S, H = hidden_states.shape
    I = layer_params[0]["w1"].shape[1]
    L = len(layer_params)
    inv_sqrt_d = 1.0 / math.sqrt(HEAD_SIZE)

    # Pack per-layer weights, folding the 1/sqrt(d) score scale into Wq and
    # fusing Wq|Wk|Wv into one (H, 3H) matrix (all done once, outside kernel).
    wqkv = jnp.stack(
        [jnp.concatenate([p["wq"] * inv_sqrt_d, p["wk"], p["wv"]], axis=1)
         for p in layer_params], 0)                              # (L, H, 3H)
    wo = jnp.stack([p["wo"] for p in layer_params], 0)           # (L, H, H)
    ln1g = jnp.stack([p["ln1_g"] for p in layer_params], 0)      # (L, 1, H)
    ln1b = jnp.stack([p["ln1_b"] for p in layer_params], 0)
    w1 = jnp.stack([p["w1"] for p in layer_params], 0)           # (L, H, I)
    b1 = jnp.stack([p["b1"] for p in layer_params], 0)           # (L, 1, I)
    w2 = jnp.stack([p["w2"] for p in layer_params], 0)           # (L, I, H)
    b2 = jnp.stack([p["b2"] for p in layer_params], 0)           # (L, 1, H)
    ln2g = jnp.stack([p["ln2_g"] for p in layer_params], 0)
    ln2b = jnp.stack([p["ln2_b"] for p in layer_params], 0)

    mask = attn_mask.astype(jnp.float32)                         # (B, S, S)

    per_batch = lambda b, l: (b, 0, 0)   # activation / mask blocks
    per_layer = lambda b, l: (l, 0, 0)   # streamed weight blocks

    in_specs = [
        pl.BlockSpec((1, S, H), per_batch),       # hidden states
        pl.BlockSpec((1, S, S), per_batch),       # additive attention mask
        pl.BlockSpec((1, H, 3 * H), per_layer),   # fused Wqkv
        pl.BlockSpec((1, H, H), per_layer),       # Wo
        pl.BlockSpec((1, 1, H), per_layer),       # ln1 gamma
        pl.BlockSpec((1, 1, H), per_layer),       # ln1 beta
        pl.BlockSpec((1, H, I), per_layer),       # W1
        pl.BlockSpec((1, 1, I), per_layer),       # b1
        pl.BlockSpec((1, I, H), per_layer),       # W2
        pl.BlockSpec((1, 1, H), per_layer),       # b2
        pl.BlockSpec((1, 1, H), per_layer),       # ln2 gamma
        pl.BlockSpec((1, 1, H), per_layer),       # ln2 beta
    ]

    kernel = functools.partial(_bert_layer_kernel, NUM_HEADS, HEAD_SIZE, LN_EPS)

    out = pl.pallas_call(
        kernel,
        out_shape=jax.ShapeDtypeStruct((B, S, H), hidden_states.dtype),
        grid=(B, L),
        in_specs=in_specs,
        out_specs=pl.BlockSpec((1, S, H), per_batch),
        scratch_shapes=[pltpu.VMEM((S, H), jnp.float32)],
        compiler_params=pltpu.CompilerParams(
            dimension_semantics=("parallel", "arbitrary"),
            vmem_limit_bytes=32 << 20),
    )(hidden_states, mask, wqkv, wo, ln1g, ln1b, w1, b1, w2, b2, ln2g, ln2b)

    return (out,)


# ---------------------------------------------------------------------------
# Pure-JAX reference (for correctness check)
# ---------------------------------------------------------------------------
def _layer_ref(hs, mask, p):
    B, S, H = hs.shape
    q = hs @ p["wq"]
    k = hs @ p["wk"]
    v = hs @ p["wv"]

    def split(x):  # (B,S,H) -> (B,nh,S,d)
        return x.reshape(B, S, NUM_HEADS, HEAD_SIZE).transpose(0, 2, 1, 3)

    qh, kh, vh = split(q), split(k), split(v)
    scores = jnp.einsum("bhqd,bhkd->bhqk", qh, kh) / math.sqrt(HEAD_SIZE)
    scores = scores + mask[:, None, :, :]
    probs = jax.nn.softmax(scores, axis=-1)
    ctx = jnp.einsum("bhqk,bhkd->bhqd", probs, vh)
    ctx = ctx.transpose(0, 2, 1, 3).reshape(B, S, H)

    def ln(x, g, b):
        u = jnp.mean(x, -1, keepdims=True)
        s = jnp.mean((x - u) ** 2, -1, keepdims=True)
        return g * ((x - u) / jnp.sqrt(s + LN_EPS)) + b

    x1 = ln(ctx @ p["wo"] + hs, p["ln1_g"][0], p["ln1_b"][0])
    inter = jax.nn.relu(x1 @ p["w1"] + p["b1"][0])
    x2 = ln(inter @ p["w2"] + p["b2"][0] + x1, p["ln2_g"][0], p["ln2_b"][0])
    return x2


def encoder_ref(hs, mask, layer_params):
    for p in layer_params:
        hs = _layer_ref(hs, mask, p)
    return hs


# ---------------------------------------------------------------------------
# Deterministic parameter init
# ---------------------------------------------------------------------------
def init_layer_params(key):
    ks = jax.random.split(key, 6)
    scale = 0.02
    return {
        # Linear layers stored as (in, out) so that y = x @ W (+ b)
        "wq": scale * jax.random.normal(ks[0], (HIDDEN, HIDDEN), jnp.float32),
        "wk": scale * jax.random.normal(ks[1], (HIDDEN, HIDDEN), jnp.float32),
        "wv": scale * jax.random.normal(ks[2], (HIDDEN, HIDDEN), jnp.float32),
        "wo": scale * jax.random.normal(ks[3], (HIDDEN, HIDDEN), jnp.float32),
        "ln1_g": jnp.ones((1, HIDDEN), jnp.float32),
        "ln1_b": jnp.zeros((1, HIDDEN), jnp.float32),
        "w1": scale * jax.random.normal(ks[4], (HIDDEN, INTERMEDIATE), jnp.float32),
        "b1": jnp.zeros((1, INTERMEDIATE), jnp.float32),
        "w2": scale * jax.random.normal(ks[5], (INTERMEDIATE, HIDDEN), jnp.float32),
        "b2": jnp.zeros((1, HIDDEN), jnp.float32),
        "ln2_g": jnp.ones((1, HIDDEN), jnp.float32),
        "ln2_b": jnp.zeros((1, HIDDEN), jnp.float32),
    }


if __name__ == "__main__":
    root = jax.random.PRNGKey(0)
    k_hs, k_mask, k_params = jax.random.split(root, 3)

    hidden_states = jax.random.normal(k_hs, (BATCH, SEQ, HIDDEN), jnp.float32)

    # Binary padding mask -> additive extended mask (0 keep, -10000 masked),
    # broadcast over query positions to shape (B, S, S).
    key_mask = (jax.random.uniform(k_mask, (BATCH, SEQ)) > 0.2).astype(jnp.float32)
    attn_mask = (1.0 - key_mask)[:, None, :] * -10000.0
    attn_mask = jnp.broadcast_to(attn_mask, (BATCH, SEQ, SEQ)).astype(jnp.float32)

    layer_keys = jax.random.split(k_params, NUM_LAYERS)
    layer_params = [init_layer_params(k) for k in layer_keys]

    out = bert_encoder_pallas(hidden_states, attn_mask, layer_params)[0]
    out = jax.block_until_ready(out)

    ref = encoder_ref(hidden_states, attn_mask, layer_params)
    assert out.shape == (BATCH, SEQ, HIDDEN)
    # slightly relaxed tolerance: softmax denom uses the EUP approx reciprocal
    assert jnp.allclose(out, ref, rtol=5e-3, atol=5e-3), "mismatch vs JAX reference"

    print("KERNEL_OK")
</pallas_src>

<mosaic_0001>
module attributes {stable_mosaic.version = 11 : i64} {
  func.func @_bert_layer_kernel(%arg0: i32, %arg1: i32, %arg2: memref<1x8x32xf32, #tpu.memory_space<vmem>>, %arg3: memref<1x8x8xf32, #tpu.memory_space<vmem>>, %arg4: memref<1x32x96xf32, #tpu.memory_space<vmem>>, %arg5: memref<1x32x32xf32, #tpu.memory_space<vmem>>, %arg6: memref<1x1x32xf32, #tpu.memory_space<vmem>>, %arg7: memref<1x1x32xf32, #tpu.memory_space<vmem>>, %arg8: memref<1x32x64xf32, #tpu.memory_space<vmem>>, %arg9: memref<1x1x64xf32, #tpu.memory_space<vmem>>, %arg10: memref<1x64x32xf32, #tpu.memory_space<vmem>>, %arg11: memref<1x1x32xf32, #tpu.memory_space<vmem>>, %arg12: memref<1x1x32xf32, #tpu.memory_space<vmem>>, %arg13: memref<1x1x32xf32, #tpu.memory_space<vmem>>, %arg14: memref<1x8x32xf32, #tpu.memory_space<vmem>>, %arg15: memref<8x32xf32, #tpu.memory_space<vmem>>) attributes {dimension_semantics = [#tpu.dimension_semantics<parallel>, #tpu.dimension_semantics<arbitrary>], iteration_bounds = array<i64: 2, 2>, scalar_prefetch = 0 : i64, scratch_operands = 1 : i64, tpu.core_type = #tpu.core_type<tc>, window_params = [{transform_indices = @transform_0, window_bounds = array<i64: 1, 8, 32>}, {transform_indices = @transform_1, window_bounds = array<i64: 1, 8, 8>}, {transform_indices = @transform_2, window_bounds = array<i64: 1, 32, 96>}, {transform_indices = @transform_3, window_bounds = array<i64: 1, 32, 32>}, {transform_indices = @transform_4, window_bounds = array<i64: 1, 1, 32>}, {transform_indices = @transform_5, window_bounds = array<i64: 1, 1, 32>}, {transform_indices = @transform_6, window_bounds = array<i64: 1, 32, 64>}, {transform_indices = @transform_7, window_bounds = array<i64: 1, 1, 64>}, {transform_indices = @transform_8, window_bounds = array<i64: 1, 64, 32>}, {transform_indices = @transform_9, window_bounds = array<i64: 1, 1, 32>}, {transform_indices = @transform_10, window_bounds = array<i64: 1, 1, 32>}, {transform_indices = @transform_11, window_bounds = array<i64: 1, 1, 32>}, {transform_indices = @transform_12, window_bounds = array<i64: 1, 8, 32>}]} {
    %c0_i32 = arith.constant 0 : i32
    %0 = arith.cmpi eq, %arg1, %c0_i32 : i32
    %1 = arith.extui %0 : i1 to i32
    %c0_i32_0 = arith.constant 0 : i32
    %2 = arith.cmpi ne, %1, %c0_i32_0 : i32
    scf.if %2 {
      %c0_58 = arith.constant 0 : index
      %c0_59 = arith.constant 0 : index
      %c0_60 = arith.constant 0 : index
      %112 = vector.load %arg2[%c0_58, %c0_59, %c0_60] : memref<1x8x32xf32, #tpu.memory_space<vmem>>, vector<1x8x32xf32>
      %113 = vector.shape_cast %112 : vector<1x8x32xf32> to vector<8x32xf32>
      %c0_61 = arith.constant 0 : index
      %c0_62 = arith.constant 0 : index
      %114 = vector.load %arg15[%c0_61, %c0_62] : memref<8x32xf32, #tpu.memory_space<vmem>>, vector<8x32xf32>
      tpu.vector_store %arg15[%c0_61, %c0_62], %113 {strides = array<i32>} : memref<8x32xf32, #tpu.memory_space<vmem>>, vector<8x32xf32>,
    } else {
    }
    %c0 = arith.constant 0 : index
    %c0_1 = arith.constant 0 : index
    %3 = vector.load %arg15[%c0, %c0_1] : memref<8x32xf32, #tpu.memory_space<vmem>>, vector<8x32xf32>
    %c0_2 = arith.constant 0 : index
    %c0_3 = arith.constant 0 : index
    %c0_4 = arith.constant 0 : index
    %4 = vector.load %arg4[%c0_2, %c0_3, %c0_4] : memref<1x32x96xf32, #tpu.memory_space<vmem>>, vector<1x32x96xf32>
    %5 = vector.shape_cast %4 : vector<1x32x96xf32> to vector<32x96xf32>
    %cst = arith.constant dense<0.000000e+00> : vector<8x96xf32>
    %6 = tpu.matmul %3, %5, %cst {dimension_numbers = #tpu.dot_dimension_numbers<[1], [0], [0], [1], [0, 0, 1, 1], [], []>} : vector<8x32xf32>, vector<32x96xf32>, vector<8x96xf32> -> vector<8x96xf32>
    %7 = vector.extract_strided_slice %6 {offsets = [0, 0], sizes = [8, 32], strides = [1, 1]} : vector<8x96xf32> to vector<8x32xf32>
    %8 = vector.shape_cast %7 : vector<8x32xf32> to vector<8x4x8xf32>
    %9 = tpu.transpose %8, [1, 0, 2] : vector<8x4x8xf32> -> vector<4x8x8xf32>
    %10 = vector.extract_strided_slice %6 {offsets = [0, 32], sizes = [8, 32], strides = [1, 1]} : vector<8x96xf32> to vector<8x32xf32>
    %11 = vector.shape_cast %10 : vector<8x32xf32> to vector<8x4x8xf32>
    %12 = tpu.transpose %11, [1, 0, 2] : vector<8x4x8xf32> -> vector<4x8x8xf32>
    %13 = vector.extract_strided_slice %6 {offsets = [0, 64], sizes = [8, 32], strides = [1, 1]} : vector<8x96xf32> to vector<8x32xf32>
    %14 = vector.shape_cast %13 : vector<8x32xf32> to vector<8x4x8xf32>
    %15 = tpu.transpose %14, [1, 0, 2] : vector<8x4x8xf32> -> vector<4x8x8xf32>
    "tpu.trace_start"() <{level = 10 : i32, message = "nqd,nkd->nqk"}> : () -> ()
    %cst_5 = arith.constant dense<0.000000e+00> : vector<4x8x8xf32>
    %16 = tpu.matmul %9, %12, %cst_5 {dimension_numbers = #tpu.dot_dimension_numbers<[2], [2], [1], [1], [0, 0, 0, 1, 1, 1], [0], [0]>} : vector<4x8x8xf32>, vector<4x8x8xf32>, vector<4x8x8xf32> -> vector<4x8x8xf32>
    "tpu.trace_stop"() : () -> ()
    %c0_6 = arith.constant 0 : index
    %c0_7 = arith.constant 0 : index
    %c0_8 = arith.constant 0 : index
    %17 = vector.load %arg3[%c0_6, %c0_7, %c0_8] : memref<1x8x8xf32, #tpu.memory_space<vmem>>, vector<1x8x8xf32>
    %18 = vector.shape_cast %17 : vector<1x8x8xf32> to vector<8x8xf32>
    %19 = vector.shape_cast %18 : vector<8x8xf32> to vector<1x8x8xf32>
    %20 = vector.broadcast %19 : vector<1x8x8xf32> to vector<4x8x8xf32>
    %21 = arith.addf %16, %20 : vector<4x8x8xf32>
    %cst_9 = arith.constant dense<0xFF800000> : vector<4x8xf32>
    %22 = vector.multi_reduction <maximumf>, %21, %cst_9 [2] : vector<4x8x8xf32> to vector<4x8xf32>
    %23 = vector.shape_cast %22 : vector<4x8xf32> to vector<4x8x1xf32>
    %24 = vector.broadcast %23 : vector<4x8x1xf32> to vector<4x8x8xf32>
    %25 = arith.subf %21, %24 : vector<4x8x8xf32>
    %26 = math.exp %25 : vector<4x8x8xf32>
    %cst_10 = arith.constant dense<0.000000e+00> : vector<4x8xf32>
    %27 = vector.multi_reduction <add>, %26, %cst_10 [2] : vector<4x8x8xf32> to vector<4x8xf32>
    %28 = vector.shape_cast %27 : vector<4x8xf32> to vector<4x8x1xf32>
    %29 = tpu.reciprocal %28 {approx = true} : vector<4x8x1xf32> -> vector<4x8x1xf32>
    %30 = vector.broadcast %29 : vector<4x8x1xf32> to vector<4x8x8xf32>
    %31 = arith.mulf %26, %30 : vector<4x8x8xf32>
    "tpu.trace_start"() <{level = 10 : i32, message = "nqk,nkd->nqd"}> : () -> ()
    %cst_11 = arith.constant dense<0.000000e+00> : vector<4x8x8xf32>
    %32 = tpu.matmul %31, %15, %cst_11 {dimension_numbers = #tpu.dot_dimension_numbers<[2], [1], [1], [2], [0, 0, 0, 1, 1, 2], [0], [0]>} : vector<4x8x8xf32>, vector<4x8x8xf32>, vector<4x8x8xf32> -> vector<4x8x8xf32>
    "tpu.trace_stop"() : () -> ()
    %33 = tpu.transpose %32, [1, 0, 2] : vector<4x8x8xf32> -> vector<8x4x8xf32>
    %34 = vector.shape_cast %33 : vector<8x4x8xf32> to vector<8x32xf32>
    %c0_12 = arith.constant 0 : index
    %c0_13 = arith.constant 0 : index
    %c0_14 = arith.constant 0 : index
    %35 = vector.load %arg5[%c0_12, %c0_13, %c0_14] : memref<1x32x32xf32, #tpu.memory_space<vmem>>, vector<1x32x32xf32>
    %36 = vector.shape_cast %35 : vector<1x32x32xf32> to vector<32x32xf32>
    %cst_15 = arith.constant dense<0.000000e+00> : vector<8x32xf32>
    %37 = tpu.matmul %34, %36, %cst_15 {dimension_numbers = #tpu.dot_dimension_numbers<[1], [0], [0], [1], [0, 0, 1, 1], [], []>} : vector<8x32xf32>, vector<32x32xf32>, vector<8x32xf32> -> vector<8x32xf32>
    %38 = arith.addf %37, %3 : vector<8x32xf32>
    %c0_16 = arith.constant 0 : index
    %c0_17 = arith.constant 0 : index
    %c0_18 = arith.constant 0 : index
    %39 = vector.load %arg6[%c0_16, %c0_17, %c0_18] : memref<1x1x32xf32, #tpu.memory_space<vmem>>, vector<1x1x32xf32>
    %40 = vector.shape_cast %39 : vector<1x1x32xf32> to vector<1x32xf32>
    %c0_19 = arith.constant 0 : index
    %c0_20 = arith.constant 0 : index
    %c0_21 = arith.constant 0 : index
    %41 = vector.load %arg7[%c0_19, %c0_20, %c0_21] : memref<1x1x32xf32, #tpu.memory_space<vmem>>, vector<1x1x32xf32>
    %42 = vector.shape_cast %41 : vector<1x1x32xf32> to vector<1x32xf32>
    %cst_22 = arith.constant dense<0.000000e+00> : vector<8xf32>
    %43 = vector.multi_reduction <add>, %38, %cst_22 [1] : vector<8x32xf32> to vector<8xf32>
    %44 = vector.shape_cast %43 : vector<8xf32> to vector<8x1xf32>
    %cst_23 = arith.constant 3.200000e+01 : f32
    %45 = vector.broadcast %cst_23 : f32 to vector<8x1xf32>
    %46 = arith.divf %44, %45 : vector<8x1xf32>
    %47 = vector.broadcast %46 : vector<8x1xf32> to vector<8x32xf32>
    %48 = arith.subf %38, %47 : vector<8x32xf32>
    %49 = arith.mulf %48, %48 : vector<8x32xf32>
    %cst_24 = arith.constant dense<0.000000e+00> : vector<8xf32>
    %50 = vector.multi_reduction <add>, %49, %cst_24 [1] : vector<8x32xf32> to vector<8xf32>
    %51 = vector.shape_cast %50 : vector<8xf32> to vector<8x1xf32>
    %cst_25 = arith.constant 3.200000e+01 : f32
    %52 = vector.broadcast %cst_25 : f32 to vector<8x1xf32>
    %53 = arith.divf %51, %52 : vector<8x1xf32>
    %54 = vector.broadcast %46 : vector<8x1xf32> to vector<8x32xf32>
    %55 = arith.subf %38, %54 : vector<8x32xf32>
    %cst_26 = arith.constant 9.99999996E-13 : f32
    %56 = vector.broadcast %cst_26 : f32 to vector<8x1xf32>
    %57 = arith.addf %53, %56 : vector<8x1xf32>
    %58 = math.rsqrt %57 : vector<8x1xf32>
    %59 = vector.broadcast %58 : vector<8x1xf32> to vector<8x32xf32>
    %60 = arith.mulf %55, %59 : vector<8x32xf32>
    %61 = vector.broadcast %40 : vector<1x32xf32> to vector<8x32xf32>
    %62 = arith.mulf %61, %60 : vector<8x32xf32>
    %63 = vector.broadcast %42 : vector<1x32xf32> to vector<8x32xf32>
    %64 = arith.addf %62, %63 : vector<8x32xf32>
    %c0_27 = arith.constant 0 : index
    %c0_28 = arith.constant 0 : index
    %c0_29 = arith.constant 0 : index
    %65 = vector.load %arg8[%c0_27, %c0_28, %c0_29] : memref<1x32x64xf32, #tpu.memory_space<vmem>>, vector<1x32x64xf32>
    %66 = vector.shape_cast %65 : vector<1x32x64xf32> to vector<32x64xf32>
    %cst_30 = arith.constant dense<0.000000e+00> : vector<8x64xf32>
    %67 = tpu.matmul %64, %66, %cst_30 {dimension_numbers = #tpu.dot_dimension_numbers<[1], [0], [0], [1], [0, 0, 1, 1], [], []>} : vector<8x32xf32>, vector<32x64xf32>, vector<8x64xf32> -> vector<8x64xf32>
    %c0_31 = arith.constant 0 : index
    %c0_32 = arith.constant 0 : index
    %c0_33 = arith.constant 0 : index
    %68 = vector.load %arg9[%c0_31, %c0_32, %c0_33] : memref<1x1x64xf32, #tpu.memory_space<vmem>>, vector<1x1x64xf32>
    %69 = vector.shape_cast %68 : vector<1x1x64xf32> to vector<1x64xf32>
    %70 = vector.broadcast %69 : vector<1x64xf32> to vector<8x64xf32>
    %71 = arith.addf %67, %70 : vector<8x64xf32>
    %cst_34 = arith.constant 0.000000e+00 : f32
    %72 = vector.broadcast %cst_34 : f32 to vector<8x64xf32>
    %73 = arith.maximumf %71, %72 : vector<8x64xf32>
    %c0_35 = arith.constant 0 : index
    %c0_36 = arith.constant 0 : index
    %c0_37 = arith.constant 0 : index
    %74 = vector.load %arg10[%c0_35, %c0_36, %c0_37] : memref<1x64x32xf32, #tpu.memory_space<vmem>>, vector<1x64x32xf32>
    %75 = vector.shape_cast %74 : vector<1x64x32xf32> to vector<64x32xf32>
    %cst_38 = arith.constant dense<0.000000e+00> : vector<8x32xf32>
    %76 = tpu.matmul %73, %75, %cst_38 {dimension_numbers = #tpu.dot_dimension_numbers<[1], [0], [0], [1], [0, 0, 1, 1], [], []>} : vector<8x64xf32>, vector<64x32xf32>, vector<8x32xf32> -> vector<8x32xf32>
    %c0_39 = arith.constant 0 : index
    %c0_40 = arith.constant 0 : index
    %c0_41 = arith.constant 0 : index
    %77 = vector.load %arg11[%c0_39, %c0_40, %c0_41] : memref<1x1x32xf32, #tpu.memory_space<vmem>>, vector<1x1x32xf32>
    %78 = vector.shape_cast %77 : vector<1x1x32xf32> to vector<1x32xf32>
    %79 = vector.broadcast %78 : vector<1x32xf32> to vector<8x32xf32>
    %80 = arith.addf %76, %79 : vector<8x32xf32>
    %81 = arith.addf %80, %64 : vector<8x32xf32>
    %c0_42 = arith.constant 0 : index
    %c0_43 = arith.constant 0 : index
    %c0_44 = arith.constant 0 : index
    %82 = vector.load %arg12[%c0_42, %c0_43, %c0_44] : memref<1x1x32xf32, #tpu.memory_space<vmem>>, vector<1x1x32xf32>
    %83 = vector.shape_cast %82 : vector<1x1x32xf32> to vector<1x32xf32>
    %c0_45 = arith.constant 0 : index
    %c0_46 = arith.constant 0 : index
    %c0_47 = arith.constant 0 : index
    %84 = vector.load %arg13[%c0_45, %c0_46, %c0_47] : memref<1x1x32xf32, #tpu.memory_space<vmem>>, vector<1x1x32xf32>
    %85 = vector.shape_cast %84 : vector<1x1x32xf32> to vector<1x32xf32>
    %cst_48 = arith.constant dense<0.000000e+00> : vector<8xf32>
    %86 = vector.multi_reduction <add>, %81, %cst_48 [1] : vector<8x32xf32> to vector<8xf32>
    %87 = vector.shape_cast %86 : vector<8xf32> to vector<8x1xf32>
    %cst_49 = arith.constant 3.200000e+01 : f32
    %88 = vector.broadcast %cst_49 : f32 to vector<8x1xf32>
    %89 = arith.divf %87, %88 : vector<8x1xf32>
    %90 = vector.broadcast %89 : vector<8x1xf32> to vector<8x32xf32>
    %91 = arith.subf %81, %90 : vector<8x32xf32>
    %92 = arith.mulf %91, %91 : vector<8x32xf32>
    %cst_50 = arith.constant dense<0.000000e+00> : vector<8xf32>
    %93 = vector.multi_reduction <add>, %92, %cst_50 [1] : vector<8x32xf32> to vector<8xf32>
    %94 = vector.shape_cast %93 : vector<8xf32> to vector<8x1xf32>
    %cst_51 = arith.constant 3.200000e+01 : f32
    %95 = vector.broadcast %cst_51 : f32 to vector<8x1xf32>
    %96 = arith.divf %94, %95 : vector<8x1xf32>
    %97 = vector.broadcast %89 : vector<8x1xf32> to vector<8x32xf32>
    %98 = arith.subf %81, %97 : vector<8x32xf32>
    %cst_52 = arith.constant 9.99999996E-13 : f32
    %99 = vector.broadcast %cst_52 : f32 to vector<8x1xf32>
    %100 = arith.addf %96, %99 : vector<8x1xf32>
    %101 = math.rsqrt %100 : vector<8x1xf32>
    %102 = vector.broadcast %101 : vector<8x1xf32> to vector<8x32xf32>
    %103 = arith.mulf %98, %102 : vector<8x32xf32>
    %104 = vector.broadcast %83 : vector<1x32xf32> to vector<8x32xf32>
    %105 = arith.mulf %104, %103 : vector<8x32xf32>
    %106 = vector.broadcast %85 : vector<1x32xf32> to vector<8x32xf32>
    %107 = arith.addf %105, %106 : vector<8x32xf32>
    %c0_53 = arith.constant 0 : index
    %c0_54 = arith.constant 0 : index
    %108 = vector.load %arg15[%c0_53, %c0_54] : memref<8x32xf32, #tpu.memory_space<vmem>>, vector<8x32xf32>
    tpu.vector_store %arg15[%c0_53, %c0_54], %107 {strides = array<i32>} : memref<8x32xf32, #tpu.memory_space<vmem>>, vector<8x32xf32>,
    %c0_55 = arith.constant 0 : index
    %c0_56 = arith.constant 0 : index
    %c0_57 = arith.constant 0 : index
    %109 = vector.load %arg14[%c0_55, %c0_56, %c0_57] : memref<1x8x32xf32, #tpu.memory_space<vmem>>, vector<1x8x32xf32>
    %110 = vector.shape_cast %109 : vector<1x8x32xf32> to vector<8x32xf32>
    %111 = vector.shape_cast %107 : vector<8x32xf32> to vector<1x8x32xf32>
    tpu.vector_store %arg14[%c0_55, %c0_56, %c0_57], %111 {strides = array<i32>} : memref<1x8x32xf32, #tpu.memory_space<vmem>>, vector<1x8x32xf32>,
    return
  }
  func.func @transform_0(%arg0: i32, %arg1: i32) -> (i32, i32, i32) {
    %c0_i32 = arith.constant 0 : i32
    %c0_i32_0 = arith.constant 0 : i32
    %c0_i32_1 = arith.constant 0 : i32
    return %arg0, %c0_i32, %c0_i32_0 : i32, i32, i32
  }
  func.func @transform_1(%arg0: i32, %arg1: i32) -> (i32, i32, i32) {
    %c0_i32 = arith.constant 0 : i32
    %c0_i32_0 = arith.constant 0 : i32
    %c0_i32_1 = arith.constant 0 : i32
    return %arg0, %c0_i32, %c0_i32_0 : i32, i32, i32
  }
  func.func @transform_2(%arg0: i32, %arg1: i32) -> (i32, i32, i32) {
    %c0_i32 = arith.constant 0 : i32
    %c0_i32_0 = arith.constant 0 : i32
    %c0_i32_1 = arith.constant 0 : i32
    return %arg1, %c0_i32, %c0_i32_0 : i32, i32, i32
  }
  func.func @transform_3(%arg0: i32, %arg1: i32) -> (i32, i32, i32) {
    %c0_i32 = arith.constant 0 : i32
    %c0_i32_0 = arith.constant 0 : i32
    %c0_i32_1 = arith.constant 0 : i32
    return %arg1, %c0_i32, %c0_i32_0 : i32, i32, i32
  }
  func.func @transform_4(%arg0: i32, %arg1: i32) -> (i32, i32, i32) {
    %c0_i32 = arith.constant 0 : i32
    %c0_i32_0 = arith.constant 0 : i32
    %c0_i32_1 = arith.constant 0 : i32
    return %arg1, %c0_i32, %c0_i32_0 : i32, i32, i32
  }
  func.func @transform_5(%arg0: i32, %arg1: i32) -> (i32, i32, i32) {
    %c0_i32 = arith.constant 0 : i32
    %c0_i32_0 = arith.constant 0 : i32
    %c0_i32_1 = arith.constant 0 : i32
    return %arg1, %c0_i32, %c0_i32_0 : i32, i32, i32
  }
  func.func @transform_6(%arg0: i32, %arg1: i32) -> (i32, i32, i32) {
    %c0_i32 = arith.constant 0 : i32
    %c0_i32_0 = arith.constant 0 : i32
    %c0_i32_1 = arith.constant 0 : i32
    return %arg1, %c0_i32, %c0_i32_0 : i32, i32, i32
  }
  func.func @transform_7(%arg0: i32, %arg1: i32) -> (i32, i32, i32) {
    %c0_i32 = arith.constant 0 : i32
    %c0_i32_0 = arith.constant 0 : i32
    %c0_i32_1 = arith.constant 0 : i32
    return %arg1, %c0_i32, %c0_i32_0 : i32, i32, i32
  }
  func.func @transform_8(%arg0: i32, %arg1: i32) -> (i32, i32, i32) {
    %c0_i32 = arith.constant 0 : i32
    %c0_i32_0 = arith.constant 0 : i32
    %c0_i32_1 = arith.constant 0 : i32
    return %arg1, %c0_i32, %c0_i32_0 : i32, i32, i32
  }
  func.func @transform_9(%arg0: i32, %arg1: i32) -> (i32, i32, i32) {
    %c0_i32 = arith.constant 0 : i32
    %c0_i32_0 = arith.constant 0 : i32
    %c0_i32_1 = arith.constant 0 : i32
    return %arg1, %c0_i32, %c0_i32_0 : i32, i32, i32
  }
  func.func @transform_10(%arg0: i32, %arg1: i32) -> (i32, i32, i32) {
    %c0_i32 = arith.constant 0 : i32
    %c0_i32_0 = arith.constant 0 : i32
    %c0_i32_1 = arith.constant 0 : i32
    return %arg1, %c0_i32, %c0_i32_0 : i32, i32, i32
  }
  func.func @transform_11(%arg0: i32, %arg1: i32) -> (i32, i32, i32) {
    %c0_i32 = arith.constant 0 : i32
    %c0_i32_0 = arith.constant 0 : i32
    %c0_i32_1 = arith.constant 0 : i32
    return %arg1, %c0_i32, %c0_i32_0 : i32, i32, i32
  }
  func.func @transform_12(%arg0: i32, %arg1: i32) -> (i32, i32, i32) {
    %c0_i32 = arith.constant 0 : i32
    %c0_i32_0 = arith.constant 0 : i32
    %c0_i32_1 = arith.constant 0 : i32
    return %arg0, %c0_i32, %c0_i32_0 : i32, i32, i32
  }
}

</mosaic_0001>

<bundles_post_ra>
// kernel: tpu_custom_call.1
= control target key start
LH: loop header
LB: loop body
LE: loop exit
PB: predicated region body
PF: predicated region fallthrough
CT: control target
= control target key end

     0   :  { %s3611_s0 = inlined_call_operand.hbm [shape: f32[2,8,32], index: 0, kind: input, shape index: {}]   ;;  %s3612_s1 = inlined_call_operand.hbm [shape: f32[2,8,8], index: 1, kind: input, shape index: {}]   ;;  %s3613_s2 = inlined_call_operand.vmem [shape: f32[2,32,96], index: 2, kind: input, shape index: {}]   ;;  %s3614_s3 = inlined_call_operand.vmem [shape: f32[2,32,32], index: 3, kind: input, shape index: {}]   ;;  %s3615_s4 = inlined_call_operand.vmem [shape: f32[2,1,32], index: 4, kind: input, shape index: {}]   ;;  %s3616_s5 = inlined_call_operand.vmem [shape: f32[2,1,32], index: 5, kind: input, shape index: {}]   ;;  %s3617_s6 = inlined_call_operand.vmem [shape: f32[2,32,64], index: 6, kind: input, shape index: {}]   ;;  %s3618_s7 = inlined_call_operand.vmem [shape: f32[2,1,64], index: 7, kind: input, shape index: {}]   ;;  %s3619_s8 = inlined_call_operand.vmem [shape: f32[2,64,32], index: 8, kind: input, shape index: {}]   ;;  %s3620_s9 = inlined_call_operand.vmem [shape: f32[2,1,32], index: 9, kind: input, shape index: {}]   ;;  %s3621_s10 = inlined_call_operand.vmem [shape: f32[2,1,32], index: 10, kind: input, shape index: {}]   ;;  %s3622_s11 = inlined_call_operand.vmem [shape: f32[2,1,32], index: 11, kind: input, shape index: {}]   ;;  %s3623_s12 = inlined_call_operand.hbm [shape: f32[2,8,32], index: 12, kind: output, shape index: {}]  }
   0x1   :  { %3641 = sst [smem:[#allocation24_spill]] %s3611_s0 }
   0x2   :  { %3642 = sst [smem:[#allocation25_spill]] %s3612_s1 }
   0x3   :  { %3643 = sst [smem:[#allocation26_spill]] %s3613_s2 }
   0x4   :  { %3644 = sst [smem:[#allocation27_spill]] %s3614_s3 }
   0x5   :  { %3645 = sst [smem:[#allocation28_spill]] %s3617_s6 }
   0x6   :  { %3646 = sst [smem:[#allocation29_spill]] %s3623_s12 }
   0x7   :  { %17 = vsyncpa [#allocation4], 0 }
   0x8   :  { %19 = vsyncpa [#allocation4 + $0x1], 0 }
   0x9   :  { %20 = vsyncpa [#allocation7], 0 }
   0xa   :  { %22 = vsyncpa [#allocation7 + $0x1], 0 }
   0xb   :  { %23 = vsyncpa [#allocation5], 0 }
   0xc   :  { %25 = vsyncpa [#allocation5 + $0x1], 0  ;;  %s3080_s21 = smov 0   ;;  %s3082_s22 = smov 0  }
   0xd   :  { %s3084_s23 = smov 0   ;;  %s3086_s24 = smov 0  }
   0xe   :  { %s3088_s25 = smov 0   ;;  %s3090_s26 = smov 0  }
   0xf   :  { %s3092_s27 = smov 0   ;;  %s3094_s28 = smov 0  }
  0x10 LB: > { %3647 = sst [smem:[#allocation12_spill]] %s2969_s21  ;;  %s2498_s29 = sadd.s32 4294967295, %s2997_s28   ;;  %s2997_s28 = sphi %s3094_s28, %s31_s28   ;;  %s2993_s27 = sphi %s3092_s27, %s3694_s27   ;;  %s2989_s26 = sphi %s3090_s26, %s3693_s26   ;;  %s2985_s25 = sphi %s3088_s25, %s3692_s25   ;;  %s2981_s24 = sphi %s3086_s24, %s3691_s24   ;;  %s2977_s23 = sphi %s3084_s23, %s3690_s23   ;;  %s2973_s22 = sphi %s3082_s22, %s3689_s22   ;;  %s2969_s21 = sphi %s3080_s21, %s3688_s21  }
  0x11   : > { %3648 = sst [smem:[#allocation13_spill]] %s2973_s22  ;;  %s2499_s30 = sadd.s32 4294967294, %s2997_s28  }
  0x12   : > { %3649 = sst [smem:[#allocation14_spill]] %s2977_s23  ;;  %s40_s13 = sadd.s32 1, %s2989_s26 }
  0x13   : > { %3650 = sst [smem:[#allocation15_spill]] %s2989_s26  ;;  %s43_s14 = sadd.s32 1, %s2993_s27 }
  0x14   : > { %3651 = sst [smem:[#allocation16_spill]] %s2993_s27  ;;  %p41_p0 = scmp.ge.s32.totalorder %s40_s13, 2 }
  0x15   : > { %3652 = sst [smem:[#allocation17_spill]] %s2997_s28  ;;  %s50_s15 = sadd.s32 1, %s2977_s23 }
  0x16   : > { %p57_p1 = scmp.ne.s32.totalorder %s2977_s23, %s2973_s22  ;;  %p58_p2 = scmp.eq.s32.totalorder %s2997_s28, 0 }
  0x17   : > { %s3696_s13 = smov (%p41_p0, %s40_s13), 0  ;;  %s3698_s14 = smov (!%p41_p0, %s43_s14), %s2993_s27 }
  0x18   : > { %3653 = sst [smem:[#allocation18_spill]] %s3696_s13  ;;  %p3131_p3 = por %p58_p2, %p57_p1 }
  0x19   : > { %p63_p4 = scmp.ne.s32.totalorder %s2973_s22, %s2969_s21  ;;  %p45_p5 = scmp.ge.s32.totalorder %s3698_s14, 2 }
  0x1a   : > { %p64_p6 = scmp.eq.s32.totalorder %s2498_s29, 0  ;;  %p373_p7 = scmp.eq.s32.totalorder %s2498_s29, 3 }
  0x1b   : > { %p379_p8 = scmp.eq.s32.totalorder %s2499_s30, 3  ;;  %s3700_s14 = smov (%p45_p5, %s3698_s14), 0 }
  0x1c   : > { %3655 = sst [smem:[#allocation19_spill]] %s3700_s14  ;;  %p3139_p9 = por %p64_p6, %p63_p4 }
  0x1d   : > { %p3143_p10 = por %p373_p7, %p57_p1  ;;  %s47_s19 = ssub.s32 %s2993_s27, %s3700_s14 }
  0x1e   : > { %s3656_s17 = scalar_select %p3139_p9, 1, 0 }
  0x1f   : > { %s3657_s18 = scalar_select %p3143_p10, 1, 0 }
  0x20   : > { %p3149_p11 = por %p379_p8, %p63_p4  ;;  %p48_p12 = scmp.eq.s32.totalorder %s47_s19, 0 }
  0x21   : > { %3658 = sst [smem:[#allocation20_spill]] %s3657_s18  ;;  %p2736_p13 = scmp.lt.s32.totalorder %s2997_s28, 4 }
  0x22   : > { %s3659_s20 = scalar_select %p3149_p11, 1, 0 }
  0x23   : > { %s3155_s29 = sand.u32 1, %s2977_s23   ;;  %s3630_s26 = sshll.u32 %s2993_s27, 7 }
  0x24   : > { %3660 = sst [smem:[#allocation21_spill]] %s3659_s20  ;;  %s3629_s13 = sshll.u32 %s3155_s29, 3 }
  0x25   : > { %s3158_s30 = scalar_select %p48_p12, %s2977_s23, %s50_s15  }
  0x26   : > { %s3662_s0 = sld [smem:[#allocation24_spill]]  ;;  %s403_s19 = scalar_lea.vmem [#allocation3], %s3629_s13 }
  0x27   : > { %3661 = sst [smem:[#allocation22_spill]] %s3158_s30  ;;  %s410_s20 = sshll.u32 %s403_s19, 4  ;;  %s3171_s20 = int_to_ptr.vmem [resolvable:$true] %s410_s20 }
  0x28   : > { %p3175_p0 = pnand %p2736_p13, %p3131_p3  ;;  %s400_s12 = scalar_lea.sflag [#allocation4], %s3155_s29 }
  0x2a   : > { %p2837_p5 = pneg %p3175_p0 }
  0x2c   : > { %s3167_s14 = scalar_lea.hbm %s3662_s0, %s3630_s26  ;;  %s2840_s16 = scalar_lea.hbm %s3662_s0, 256 }
  0x2d   : > { %s2835_s21 = scalar_lea.hbm %s3167_s14, 128  ;;  %p2841_p3 = scmp.lt.u32.totalorder %s3167_s14, %s3662_s0 }
  0x2e   : > { %p2836_p4 = scmp.ne.s32.totalorder %s3167_s14, %s2835_s21  ;;  %p2842_p8 = scmp.lt.u32.totalorder %s2840_s16, %s2835_s21 }
  0x2f   : > { %p2844_p13 = scmp.lt.u32.totalorder %s2835_s21, %s3167_s14 }
  0x30   : > { %p2838_p6 = pnand %p2837_p5, %p2836_p4  ;;  %p2843_p12 = por %p2842_p8, %p2841_p3 }
  0x32   : > { %p2839_p7 = pneg %p2838_p6  ;;  %p2845_p1 = por %p2844_p13, %p2843_p12 }
  0x34   : > { %p2846_p2 = pnand %p2845_p1, %p2839_p7 }
  0x36   : > { %2849 = shalt.err (!%p2846_p2)
}
  0x37   : > { %s2850_s23 = scalar_lea.vmem %s3171_s20, 128  ;;  %s2999_s13 = smov [#allocation3]  }
  0x38   : > { %p2851_p4 = scmp.ne.s32.totalorder %s3171_s20, %s2850_s23  ;;  %s2855_s19 = sshll.u32 %s2999_s13, 4  ;;  %s2856_s19 = int_to_ptr.vmem [resolvable:$false] %s2855_s19 }
  0x39   : > { %s2857_s26 = scalar_lea.vmem %s2856_s19, 256  ;;  %p2858_p10 = scmp.lt.s32.totalorder %s3171_s20, %s2856_s19 }
  0x3a   : > { %p2853_p6 = pnand %p2851_p4, %p2837_p5  ;;  %p2859_p3 = scmp.lt.s32.totalorder %s2857_s26, %s2850_s23 }
  0x3c   : > { %p2854_p11 = pneg %p2853_p6  ;;  %p2860_p8 = por %p2859_p3, %p2858_p10 }
  0x3e   : > { %p2861_p12 = pnand %p2860_p8, %p2854_p11 }
  0x40   : > { %2864 = shalt.err (!%p2861_p12)
}
  0x41   : > { %2728 = dma.hbm_to_vmem [thread:$0]  (!%p3175_p0), %s3167_s14, 128, %s3171_s20, %s400_s12  }
  0x42   : > { %p3664_p1 = scmp.lt.s32.totalorder %s2997_s28, 5  ;;  %p3665_p2 = scmp.ge.s32.totalorder %s2997_s28, 1 }
  0x43   : > { %s3667_s23 = sshll.u32 %s2993_s27, 7  ;;  %s3668_s1 = sld [smem:[#allocation25_spill]] }
  0x44   : > { %p3211_p7 = pnand %p3665_p2, %p3664_p1  ;;  %s3669_s19 = sshll.u32 %s3155_s29, 3 }
  0x45   : > { %s421_s26 = scalar_lea.vmem [#allocation6], %s3669_s19  ;;  %s418_s14 = scalar_lea.sflag [#allocation7], %s3155_s29 }
  0x46   : > { %s3666_s30 = scalar_select %p3211_p7, 1, 0 }
  0x47   : > { %s428_s0 = sshll.u32 %s421_s26, 4  ;;  %s429_s0 = int_to_ptr.vmem [resolvable:$true] %s428_s0 }
  0x49   : > { %s3220_s13 = scalar_lea.hbm %s3668_s1, %s3667_s23  ;;  %s2870_s23 = scalar_lea.hbm %s3668_s1, 256 }
  0x4a   : > { %s2865_s20 = scalar_lea.hbm %s3220_s13, 128  ;;  %p2871_p4 = scmp.lt.u32.totalorder %s3220_s13, %s3668_s1 }
  0x4b   : > { %p2866_p10 = scmp.ne.s32.totalorder %s3220_s13, %s2865_s20  ;;  %p2872_p6 = scmp.lt.u32.totalorder %s2870_s23, %s2865_s20 }
  0x4c   : > { %p2874_p8 = scmp.lt.u32.totalorder %s2865_s20, %s3220_s13 }
  0x4d   : > { %p2868_p11 = pnand %p2866_p10, %p2837_p5  ;;  %p2873_p3 = por %p2872_p6, %p2871_p4 }
  0x4f   : > { %p2869_p13 = pneg %p2868_p11  ;;  %p2875_p12 = por %p2874_p8, %p2873_p3 }
  0x51   : > { %p2876_p1 = pnand %p2875_p12, %p2869_p13 }
  0x53   : > { %2879 = shalt.err (!%p2876_p1)
}
  0x54   : > { %s2880_s29 = scalar_lea.vmem %s429_s0, 128  ;;  %s3000_s19 = smov [#allocation6]  }
  0x55   : > { %p2881_p2 = scmp.ne.s32.totalorder %s429_s0, %s2880_s29  ;;  %s2885_s27 = sshll.u32 %s3000_s19, 4  ;;  %s2886_s27 = int_to_ptr.vmem [resolvable:$false] %s2885_s27 }
  0x56   : > { %s2887_s26 = scalar_lea.vmem %s2886_s27, 256  ;;  %p2888_p9 = scmp.lt.s32.totalorder %s429_s0, %s2886_s27 }
  0x57   : > { %p2883_p10 = pnand %p2881_p2, %p2837_p5  ;;  %p2889_p7 = scmp.lt.s32.totalorder %s2887_s26, %s2880_s29 }
  0x59   : > { %p2884_p11 = pneg %p2883_p10  ;;  %p2890_p4 = por %p2889_p7, %p2888_p9 }
  0x5b   : > { %p2891_p6 = pnand %p2890_p4, %p2884_p11 }
  0x5d   : > { %2894 = shalt.err (!%p2891_p6)
}
  0x5e   : > { %2731 = dma.hbm_to_vmem [thread:$0]  (!%p3175_p0), %s3220_s13, 128, %s429_s0, %s418_s14  }
  0x5f   : > { %p3670_p13 = scmp.ne.s32.totalorder %s3666_s30, 0 }
  0x61   : > { %505 = sbr.rel (%p3670_p13) target bundleno = 2790 (0xae6), region = 68 }
  0x68   : > { %s3247_s20 = sand.u32 1, %s2973_s22   ;;  %p3672_p9 = scmp.ne.s32.totalorder %s3656_s17, 0 }
  0x69   : > { %3671 = sst [smem:[#allocation23_spill]] %s3247_s20  ;;  %s3250_s12 = sshll.u32 %s3247_s20, 3 }
  0x6a   : > { %s508_s23 = scalar_lea.sflag [#allocation4], %s3247_s20  ;;  %s511_s21 = scalar_lea.vmem [#allocation3], %s3250_s12 }
  0x6b   : > { %2956 = dma.done.wait (%p3672_p9), %s508_s23, 128  }
  0x6c   : > { %2958 = vsyncadd (%p3672_p9), %s508_s23, 4294967168  ;;  %s517_s0 = scalar_lea.sflag [#allocation7], %s3247_s20 }
  0x6d   : > { %2960 = dma.done.wait (%p3672_p9), %s517_s0, 128  }
  0x6e   : > { %2962 = vsyncadd (%p3672_p9), %s517_s0, 4294967168  ;;  %p604_p0 = scmp.lt.s32.totalorder %s2981_s24, 1  ;;  %s3673_s2 = sld [smem:[#allocation26_spill]] }
  0x6f   : > { %s3674_s3 = sld [smem:[#allocation27_spill]]  ;;  %s3675_s6 = sld [smem:[#allocation28_spill]] }
  0x70   : > { %s3266_s30 = scalar_select %p604_p0, %s2981_s24, 1 }
  0x71   : > { %s603_s14 = scalar_lea.vmem [#allocation8], %s3250_s12  ;;  %p2518_p5 = scmp.ne.s32.totalorder %s2981_s24, 0 }
  0x72   : > { %s2553_s13 = sshll.u32 %s3266_s30, 5  ;;  %s627_s17 = scalar_lea.vmem %s3618_s7, %s3266_s30  ;;  %v646_v0 = vld [vmem:[%s511_s21] sm:$0xff] (!%p2518_p5)  ;;  %vm647_vm0 = vcmask (!%p2518_p5), 261120  }
  0x73   : > { %s2556_s29 = sshll.u32 %s3266_s30, 6  ;;  %s635_s1 = scalar_lea.vmem %s3620_s9, %s3266_s30  ;;  %648 = vst.msk [vmem:[#allocation2] sm:$0xff] (!%p2518_p5), %vm647_vm0, %v646_v0 }
  0x74   : > { %s608_s27 = scalar_lea.vmem %s3673_s2, %s2553_s13  ;;  %s3298_s26 = scalar_lea.vmem %s3619_s8, %s2556_s29 }
  0x75   : > { %s3279_s0 = scalar_lea.vmem %s3674_s3, %s2553_s13  ;;  %s3288_s20 = scalar_lea.vmem %s3675_s6, %s2553_s13 }
  0x76   : > { %s638_s28 = scalar_lea.vmem %s3621_s10, %s3266_s30  ;;  %s641_s6 = scalar_lea.vmem %s3622_s11, %s3266_s30 }
  0x77   : > { %645 = sbr.rel (%p2518_p5) target bundleno = 126 (0x7e), region = 80 }
  0x7e PF: > { %v650_v1 = vld [vmem:[%s608_s27] sm:$0xff]  ;;  %v651_v2 = vld [vmem:[%s608_s27 + $0x8] sm:$0xff]  ;;  %v652_v3 = vld [vmem:[%s608_s27 + $0x10] sm:$0xff]  ;;  %v3001_v4 = vmov 0.0|0.0   ;;  %vm3002_vm1 = vmmov 0   ;;  %v3003_v7 = vmov 0.0   ;;  %v743_v17 = vlaneseq  ;;  %s3677_s23 = scalar_lea.vmem %s3615_s4, %s3266_s30  ;;  %s3678_s13 = scalar_lea.vmem %s3616_s5, %s3266_s30 }
  0x7f   : > { %2689 = vmatprep.subr.bf16.mxu1 %v3001_v4  ;;  %v2690_v5 = vpack.c.bf16 %v651_v2, %v650_v1  ;;  %v653_v6 = vld [vmem:[%s608_s27 + $0x18] sm:$0xff]  ;;  %2605 = vmatprep.mubr.msk.f32.mxu1 %vm3002_vm1, %v3003_v7  ;;  %v3321_v9 = vld [vmem:[#allocation2] sm:$0xff]  ;;  %vm654_vm2 = vcmask 261120   ;;  %s3004_s2 = smov 104   ;;  %s3005_s3 = smov 120   ;;  %vm1171_vm3 = vcmask 64512  }
  0x80   : > { %2618 = vmatprep.subr.mxu0 %v3003_v7  ;;  %2620 = vmatprep.mubr.msk.f32.mxu0 %vm3002_vm1, %v3003_v7  ;;  %v2693_v8 = vpack.c.bf16 %v653_v6, %v652_v3  ;;  %s3006_s22 = smov 96   ;;  %s3007_s24 = smov 112   ;;  %v3008_v15 = vmov 1983009808   ;;  %v744_v19 = vshrl.u32 %v743_v17, 7  ;;  %vm1961_vm4 = vcmask 130048  }
  0x81   : > { %2691 = vmatpush3.bf16.msra.mxu1 %v2690_v5  ;;  %v741_v16 = vunpack.c.l.s4 %v3008_v15  ;;  %v3009_v20 = vmov 1934713408   ;;  %s3676_s21 = scalar_lea.vmem [#allocation6], %s3250_s12  ;;  %s3010_s27 = smov 64   ;;  %vm1963_vm5 = vcmask 195584   ;;  %vm2172_vm6 = vcmask 523264  }
  0x82   : > { %2692 = vmatprep.subr.bf16.mxu1 %v3001_v4  ;;  %v773_v21 = vunpack.c.l.s4 %v3009_v20  ;;  %s3012_s16 = smov 8   ;;  %s3013_s29 = smov 24  }
  0x83   : > { %v742_v18 = vunpack.c.0.s8 %v741_v16  ;;  %s3014_s30 = smov [#allocation8]  }
  0x84   : > { %v774_v27 = vunpack.c.0.s8 %v773_v21 }
  0x85   : > { %2694 = vmatpush3.bf16.msra.mxu1 %v2693_v8  ;;  %v3347_v24 = vsub.s32 %v742_v18, %v744_v19 }
  0x86   : > { %2608 = vmatprep.subr.mxu1 %v3003_v7  ;;  %v3357_v32 = vsub.s32 %v774_v27, %v744_v19 }
  0x88   : > { %2606 = vmatmul.mubr.msk.f32.vlgmr.msra.gmra.mrb[0].mxu1 %vm654_vm2, %v3321_v9 }
  0x89   : > { %2610 = vmatprep.mubr.msk.f32.mxu1 %vm3002_vm1, %v3003_v7 }
 0x15b   : > { %v3328_v10 = vpop.f32.mrb[0].mxu1 }
 0x15c   : > { %735 = vrot.lane.b32.xlu1 %v3328_v10, %s3004_s2  ;;  %729 = vrot.lane.b32.xlu0 %v3328_v10, %s3005_s3  ;;  %v2607_v11 = vpop.f32.mrb[1].mxu1 }
 0x160   : > { %874 = vrot.lane.b32.xlu1 %v3328_v10, %s3006_s22  ;;  %732 = vrot.lane.b32.xlu0 %v3328_v10, %s3007_s24 }
 0x1ce   : > { %v3334_v12 = vpop.permute.xlu0 %729  ;;  %v3337_v13 = vpop.permute.xlu1 %735 }
 0x1cf   : > { %876 = vrot.lane.b32.xlu0 %v3334_v12, %s3006_s22  ;;  %v754_v25 = vcombine.low %v3334_v12, %v3337_v13  ;;  %v755_v26 = vcombine.high %v3334_v12, %v3337_v13 }
 0x1d1   : > { %v762_v30 = vrot.slane %v754_v25, %v3347_v24  ;;  %v769_v31 = vrot.slane %v755_v26, %v3347_v24 }
 0x1d2   : > { %v3339_v14 = vpop.permute.xlu0 %732  ;;  %v875_v33 = vpop.permute.xlu1 %874 }
 0x1d3   : > { %880 = vrot.lane.b32.xlu0 %v3337_v13, %s3006_s22  ;;  %878 = vrot.lane.b32.xlu1 %v3339_v14, %s3006_s22  ;;  %v738_v22 = vcombine.low %v3328_v10, %v3339_v14  ;;  %v739_v23 = vcombine.high %v3328_v10, %v3339_v14 }
 0x1d5   : > { %v746_v28 = vrot.slane %v738_v22, %v3347_v24  ;;  %v753_v29 = vrot.slane %v739_v23, %v3347_v24 }
 0x1d7   : > { %v770_v34 = vcombine.low %v746_v28, %v762_v30  ;;  %v771_v35 = vcombine.high %v746_v28, %v762_v30  ;;  %v786_v36 = vcombine.low %v753_v29, %v769_v31  ;;  %v787_v37 = vcombine.high %v753_v29, %v769_v31 }
 0x1d9   : > { %v778_v39 = vrot.slane %v770_v34, %v3357_v32  ;;  %v785_v40 = vrot.slane %v771_v35, %v3357_v32  ;;  %v794_v41 = vrot.slane %v786_v36, %v3357_v32  ;;  %v801_v42 = vrot.slane %v787_v37, %v3357_v32 }
 0x1db   : > { %v806_v53 = vcombine.low %v778_v39, %v785_v40  ;;  %v2520_v54 = vcombine.high %v778_v39, %v785_v40  ;;  %v822_v55 = vcombine.low %v794_v41, %v801_v42  ;;  %v2521_v56 = vcombine.high %v794_v41, %v801_v42 }
 0x1dd   : > { %v813_v1 = vrot.slane %v806_v53, %v3347_v24  ;;  %v821_v2 = vrot.slane %v2520_v54, %v3347_v24  ;;  %v829_v3 = vrot.slane %v822_v55, %v3347_v24  ;;  %v837_v5 = vrot.slane %v2521_v56, %v3347_v24 }
 0x1df   : > { %v838_v20 = vcombine.low %v813_v1, %v821_v2  ;;  %v854_v21 = vcombine.low %v829_v3, %v837_v5  ;;  %v839_v22 = vcombine.high %v813_v1, %v821_v2  ;;  %v855_v23 = vcombine.high %v829_v3, %v837_v5 }
 0x1e1   : > { %v846_v34 = vrot.slane %v838_v20, %v3357_v32  ;;  %v862_v35 = vrot.slane %v854_v21, %v3357_v32  ;;  %v853_v36 = vrot.slane %v839_v22, %v3357_v32  ;;  %v869_v37 = vrot.slane %v855_v23, %v3357_v32 }
 0x1e3   : > { %v870_v40 = vcombine.low %v846_v34, %v862_v35  ;;  %v872_v41 = vcombine.low %v853_v36, %v869_v37 }
 0x241   : > { %v877_v38 = vpop.permute.xlu0 %876 }
 0x245   : > { %v879_v43 = vpop.permute.xlu1 %878  ;;  %v881_v44 = vpop.permute.xlu0 %880 }
 0x246   : > { %v886_v45 = vcombine.low %v875_v33, %v879_v43  ;;  %v887_v46 = vcombine.high %v875_v33, %v879_v43  ;;  %v902_v47 = vcombine.low %v877_v38, %v881_v44  ;;  %v903_v48 = vcombine.high %v877_v38, %v881_v44 }
 0x247   : > { %v871_v43 = vcombine.high %v846_v34, %v862_v35 }
 0x248   : > { %v894_v49 = vrot.slane %v886_v45, %v3347_v24  ;;  %v901_v50 = vrot.slane %v887_v46, %v3347_v24  ;;  %v910_v51 = vrot.slane %v902_v47, %v3347_v24  ;;  %v917_v52 = vrot.slane %v903_v48, %v3347_v24  ;;  %v1170_v46 = vld [vmem:[%s3676_s21] sm:$0xff] }
 0x249   : > { %v873_v45 = vcombine.high %v853_v36, %v869_v37 }
 0x24a   : > { %v918_v57 = vcombine.low %v894_v49, %v910_v51  ;;  %v919_v58 = vcombine.high %v894_v49, %v910_v51  ;;  %v934_v59 = vcombine.low %v901_v50, %v917_v52  ;;  %v935_v60 = vcombine.high %v901_v50, %v917_v52 }
 0x24c   : > { %v926_v61 = vrot.slane %v918_v57, %v3357_v32  ;;  %v933_v62 = vrot.slane %v919_v58, %v3357_v32  ;;  %v942_v63 = vrot.slane %v934_v59, %v3357_v32  ;;  %v949_v0 = vrot.slane %v935_v60, %v3357_v32 }
 0x24e   : > { %v954_v6 = vcombine.low %v926_v61, %v933_v62  ;;  %v2522_v8 = vcombine.high %v926_v61, %v933_v62  ;;  %v970_v11 = vcombine.low %v942_v63, %v949_v0  ;;  %v2523_v15 = vcombine.high %v942_v63, %v949_v0 }
 0x250   : > { %v961_v16 = vrot.slane %v954_v6, %v3347_v24  ;;  %v969_v17 = vrot.slane %v2522_v8, %v3347_v24  ;;  %v977_v18 = vrot.slane %v970_v11, %v3347_v24  ;;  %v985_v19 = vrot.slane %v2523_v15, %v3347_v24 }
 0x252   : > { %v986_v25 = vcombine.low %v961_v16, %v969_v17  ;;  %v1002_v26 = vcombine.low %v977_v18, %v985_v19  ;;  %v987_v27 = vcombine.high %v961_v16, %v969_v17  ;;  %v1003_v28 = vcombine.high %v977_v18, %v985_v19 }
 0x254   : > { %v994_v29 = vrot.slane %v986_v25, %v3357_v32  ;;  %v1010_v30 = vrot.slane %v1002_v26, %v3357_v32  ;;  %v1001_v31 = vrot.slane %v987_v27, %v3357_v32  ;;  %v1017_v33 = vrot.slane %v1003_v28, %v3357_v32 }
 0x256   : > { %v1018_v38 = vcombine.low %v994_v29, %v1010_v30  ;;  %v1020_v39 = vcombine.low %v1001_v31, %v1017_v33  ;;  %v1019_v42 = vcombine.high %v994_v29, %v1010_v30  ;;  %v1021_v44 = vcombine.high %v1001_v31, %v1017_v33 }
 0x258   : > { %2609 = vmatpush3.xpose.msk.msra.mxu1 %vm1171_vm3, %v1018_v38  ;;  %2619 = vmatpush3.xpose.msk.msra.mxu0 %vm1171_vm3, %v1020_v39 }
 0x259   : > { %2613 = vmatprep.subr.mxu1 %v3003_v7  ;;  %2628 = vmatprep.subr.mxu0 %v3003_v7 }
 0x25b   : > { %2611 = vmatmul.mubr.msk.f32.vlgmr.msra.gmra.mrb[2].mxu1 %vm1171_vm3, %v870_v40  ;;  %2621 = vmatmul.mubr.msk.f32.vlgmr.msra.gmra.mrb[0].mxu0 %vm1171_vm3, %v872_v41 }
 0x25c   : > { %2614 = vmatpush3.xpose.msk.msra.mxu1 %vm1171_vm3, %v1019_v42  ;;  %2615 = vmatprep.mubr.msk.f32.mxu1 %vm3002_vm1, %v3003_v7 }
 0x25d   : > { %2623 = vmatprep.subr.mxu1 %v3003_v7  ;;  %2630 = vmatprep.mubr.msk.f32.mxu0 %vm3002_vm1, %v3003_v7 }
 0x25f   : > { %2616 = vmatmul.mubr.msk.f32.vlgmr.msra.gmra.mrb[4].mxu1 %vm1171_vm3, %v871_v43 }
 0x260   : > { %2624 = vmatpush3.xpose.msk.msra.mxu1 %vm1171_vm3, %v1021_v44  ;;  %2625 = vmatprep.mubr.msk.f32.mxu1 %vm3002_vm1, %v3003_v7 }
 0x261   : > { %2633 = vmatprep.subr.mxu1 %v3003_v7 }
 0x263   : > { %2626 = vmatmul.mubr.msk.f32.vlgmr.msra.gmra.mrb[6].mxu1 %vm1171_vm3, %v873_v45 }
 0x264   : > { %2635 = vmatprep.mubr.msk.f32.mxu1 %vm3002_vm1, %v3003_v7 }
 0x32e   : > { %v1244_v47 = vpop.f32.mrb[2].mxu1  ;;  %v1396_v48 = vpop.f32.mrb[0].mxu0 }
 0x32f   : > { %v1245_v49 = vadd.f32 %v1244_v47, %v1170_v46  ;;  %v2612_v50 = vpop.f32.mrb[3].mxu1  ;;  %v2622_v51 = vpop.f32.mrb[1].mxu0  ;;  %v1397_v56 = vadd.f32 %v1396_v48, %v1170_v46 }
 0x331   : > { %v1476_v52 = vsel %vm1171_vm3, %v1245_v49, -inf  ;;  %v1482_v61 = vsel %vm1171_vm3, %v1397_v56, -inf }
 0x332   : > { %1477 = vmax.xlane.f32.xlu1 %v1476_v52  ;;  %v1320_v53 = vpop.f32.mrb[4].mxu1 }
 0x333   : > { %v1321_v54 = vadd.f32 %v1320_v53, %v1170_v46  ;;  %v2617_v55 = vpop.f32.mrb[5].mxu1 }
 0x335   : > { %v1479_v57 = vsel %vm1171_vm3, %v1321_v54, -inf }
 0x336   : > { %1480 = vmax.xlane.f32.xlu0 %v1479_v57  ;;  %v1472_v58 = vpop.f32.mrb[6].mxu1 }
 0x337   : > { %v1473_v59 = vadd.f32 %v1472_v58, %v1170_v46  ;;  %v2627_v60 = vpop.f32.mrb[7].mxu1 }
 0x339   : > { %v1485_v62 = vsel %vm1171_vm3, %v1473_v59, -inf }
 0x33a   : > { %1483 = vmax.xlane.f32.xlu0 %v1482_v61  ;;  %1486 = vmax.xlane.f32.xlu1 %v1485_v62 }
 0x34b   : > { %1024 = vrot.lane.b32.xlu1 %v3334_v12, %s3010_s27 }
 0x350   : > { %1022 = vrot.lane.b32.xlu0 %v3328_v10, %s3010_s27 }
 0x3bf   : > { %v1478_v63 = vpop.xlane.xlu1 %1477 }
 0x3c0   : > { %v1488_v0 = vsub.f32 %v1245_v49, %v1478_v63 }
 0x3c2   : > { %v1492_v1 = vmul.f32 1.442695, %v1488_v0 }
 0x3c3   : > { %v1481_v2 = vpop.xlane.xlu0 %1480 }
 0x3c4   : > { %2815 = vpow2.f32 %v1492_v1  ;;  %v1489_v3 = vsub.f32 %v1321_v54, %v1481_v2 }
 0x3c6   : > { %v1494_v5 = vmul.f32 1.442695, %v1489_v3 }
 0x3c7   : > { %v1484_v6 = vpop.xlane.xlu0 %1483  ;;  %v1487_v8 = vpop.xlane.xlu1 %1486 }
 0x3c8   : > { %2817 = vpow2.f32 %v1494_v5  ;;  %v1490_v11 = vsub.f32 %v1397_v56, %v1484_v6  ;;  %v1491_v15 = vsub.f32 %v1473_v59, %v1487_v8 }
 0x3ca   : > { %v1496_v16 = vmul.f32 1.442695, %v1490_v11  ;;  %v1498_v17 = vmul.f32 1.442695, %v1491_v15 }
 0x3cb   : > { %v1023_v25 = vpop.permute.xlu0 %1022  ;;  %v1025_v26 = vpop.permute.xlu1 %1024 }
 0x3cc   : > { %2819 = vpow2.f32 %v1496_v16 }
 0x3cd   : > { %2821 = vpow2.f32 %v1498_v17 }
 0x3ce   : > { %v3417_v12 = vpop.eup %2815 }
 0x3cf   : > { %v1500_v10 = vsel %vm1171_vm3, %v3417_v12, 0.0 }
 0x3d0   : > { %1501 = vadd.xlane.f32.xlu0 %v1500_v10  ;;  %v1965_v10 = vld [vmem:[%s3279_s0] sm:$0xff] }
 0x3d2   : > { %v2818_v18 = vpop.eup %2817 }
 0x3d3   : > { %v1503_v19 = vsel %vm1171_vm3, %v2818_v18, 0.0 }
 0x3d4   : > { %1504 = vadd.xlane.f32.xlu1 %v1503_v19 }
 0x3d6   : > { %v3422_v20 = vpop.eup %2819 }
 0x3d7   : > { %v3424_v21 = vpop.eup %2821  ;;  %v1506_v22 = vsel %vm1171_vm3, %v3422_v20, 0.0 }
 0x3d8   : > { %1507 = vadd.xlane.f32.xlu0 %v1506_v22  ;;  %v1509_v23 = vsel %vm1171_vm3, %v3424_v21, 0.0 }
 0x3d9   : > { %1510 = vadd.xlane.f32.xlu1 %v1509_v23 }
 0x3ea   : > { %1026 = vrot.lane.b32.xlu1 %v3339_v14, %s3010_s27 }
 0x3ee   : > { %1028 = vrot.lane.b32.xlu0 %v3337_v13, %s3010_s27 }
 0x45d   : > { %v1502_v27 = vpop.xlane.xlu0 %1501 }
 0x45e   : > { %2823 = vrcp.f32 %v1502_v27 }
 0x461   : > { %v1505_v28 = vpop.xlane.xlu1 %1504 }
 0x462   : > { %2825 = vrcp.f32 %v1505_v28 }
 0x465   : > { %v1508_v29 = vpop.xlane.xlu0 %1507 }
 0x466   : > { %v1511_v30 = vpop.xlane.xlu1 %1510  ;;  %2827 = vrcp.f32 %v1508_v29 }
 0x467   : > { %2829 = vrcp.f32 %v1511_v30 }
 0x468   : > { %v2824_v58 = vpop.eup %2823 }
 0x469   : > { %v1029_v31 = vpop.permute.xlu0 %1028  ;;  %v1516_v6 = vmul.f32 %v2824_v58, %v3417_v12 }
 0x46a   : > { %v1050_v33 = vcombine.low %v1025_v26, %v1029_v31  ;;  %v1051_v34 = vcombine.high %v1025_v26, %v1029_v31  ;;  %v1027_v35 = vpop.permute.xlu1 %1026 }
 0x46b   : > { %v1034_v36 = vcombine.low %v1023_v25, %v1027_v35  ;;  %v1035_v37 = vcombine.high %v1023_v25, %v1027_v35 }
 0x46c   : > { %v1058_v38 = vrot.slane %v1050_v33, %v3347_v24  ;;  %v1065_v39 = vrot.slane %v1051_v34, %v3347_v24  ;;  %v2826_v62 = vpop.eup %2825 }
 0x46d   : > { %v1042_v14 = vrot.slane %v1034_v36, %v3347_v24  ;;  %v1049_v13 = vrot.slane %v1035_v37, %v3347_v24  ;;  %v1517_v8 = vmul.f32 %v2826_v62, %v2818_v18  ;;  %v1966_v18 = vld [vmem:[%s3279_s0 + $0x8] sm:$0xff] }
 0x46e   : > { %v2696_v19 = vpack.c.bf16 %v1966_v18, %v1965_v10 }
 0x46f   : > { %v1066_v40 = vcombine.low %v1042_v14, %v1058_v38  ;;  %v1067_v41 = vcombine.high %v1042_v14, %v1058_v38  ;;  %v1082_v42 = vcombine.low %v1049_v13, %v1065_v39  ;;  %v1083_v43 = vcombine.high %v1049_v13, %v1065_v39 }
 0x470   : > { %v2828_v5 = vpop.eup %2827 }
 0x471   : > { %v1074_v44 = vrot.slane %v1066_v40, %v3357_v32  ;;  %v1081_v45 = vrot.slane %v1067_v41, %v3357_v32  ;;  %v1090_v46 = vrot.slane %v1082_v42, %v3357_v32  ;;  %v1097_v47 = vrot.slane %v1083_v43, %v3357_v32  ;;  %v2830_v11 = vpop.eup %2829  ;;  %v1967_v40 = vld [vmem:[%s3279_s0 + $0x10] sm:$0xff]  ;;  %v1968_v41 = vld [vmem:[%s3279_s0 + $0x18] sm:$0xff]  ;;  %s3011_s0 = smov 16  }
 0x472   : > { %v1518_v17 = vmul.f32 %v2828_v5, %v3422_v20  ;;  %v1519_v12 = vmul.f32 %v2830_v11, %v3424_v21 }
 0x473   : > { %v1102_v48 = vcombine.low %v1074_v44, %v1081_v45  ;;  %v2524_v49 = vcombine.high %v1074_v44, %v1081_v45  ;;  %v1118_v50 = vcombine.low %v1090_v46, %v1097_v47  ;;  %v2525_v51 = vcombine.high %v1090_v46, %v1097_v47 }
 0x474   : > { %v2699_v46 = vpack.c.bf16 %v1968_v41, %v1967_v40  ;;  %v2542_v40 = vld [vmem:[%s3678_s13] ss:$0 sm:$0xff] }
 0x475   : > { %v1109_v52 = vrot.slane %v1102_v48, %v3347_v24  ;;  %v1117_v53 = vrot.slane %v2524_v49, %v3347_v24  ;;  %v1125_v54 = vrot.slane %v1118_v50, %v3347_v24  ;;  %v1133_v55 = vrot.slane %v2525_v51, %v3347_v24 }
 0x477   : > { %v1134_v56 = vcombine.low %v1109_v52, %v1117_v53  ;;  %v1135_v57 = vcombine.high %v1109_v52, %v1117_v53  ;;  %v1150_v59 = vcombine.low %v1125_v54, %v1133_v55  ;;  %v1151_v60 = vcombine.high %v1125_v54, %v1133_v55 }
 0x479   : > { %v1142_v61 = vrot.slane %v1134_v56, %v3357_v32  ;;  %v1158_v63 = vrot.slane %v1150_v59, %v3357_v32  ;;  %v1149_v0 = vrot.slane %v1135_v57, %v3357_v32  ;;  %v1165_v1 = vrot.slane %v1151_v60, %v3357_v32 }
 0x47b   : > { %v1166_v2 = vcombine.low %v1142_v61, %v1158_v63  ;;  %v1167_v3 = vcombine.high %v1142_v61, %v1158_v63  ;;  %v1168_v15 = vcombine.low %v1149_v0, %v1165_v1  ;;  %v1169_v16 = vcombine.high %v1149_v0, %v1165_v1 }
 0x47d   : > { %2629 = vmatpush3.msra.mxu0 %v1166_v2  ;;  %2634 = vmatpush3.msra.mxu1 %v1167_v3 }
 0x47e   : > { %2631 = vmatmul.mubr.msk.f32.vlgmr.msra.gmra.mrb[2].mxu0 %vm1171_vm3, %v1516_v6  ;;  %2636 = vmatmul.mubr.msk.f32.vlgmr.msra.gmra.mrb[8].mxu1 %vm1171_vm3, %v1517_v8 }
 0x47f   : > { %2638 = vmatprep.subr.mxu0 %v3003_v7  ;;  %2643 = vmatprep.subr.mxu1 %v3003_v7 }
 0x480   : > { %2639 = vmatpush3.msra.mxu0 %v1168_v15  ;;  %2644 = vmatpush3.msra.mxu1 %v1169_v16 }
 0x481   : > { %2640 = vmatprep.mubr.msk.f32.mxu0 %vm3002_vm1, %v3003_v7  ;;  %2645 = vmatprep.mubr.msk.f32.mxu1 %vm3002_vm1, %v3003_v7 }
 0x482   : > { %2641 = vmatmul.mubr.msk.f32.vlgmr.msra.gmra.mrb[4].mxu0 %vm1171_vm3, %v1518_v17  ;;  %2646 = vmatmul.mubr.msk.f32.vlgmr.msra.gmra.mrb[10].mxu1 %vm1171_vm3, %v1519_v12 }
 0x483   : > { %2695 = vmatprep.subr.bf16.mxu0 %v3001_v4  ;;  %2656 = vmatprep.mubr.msk.f32.mxu0 %vm3002_vm1, %v3003_v7 }
 0x484   : > { %2701 = vmatprep.subr.bf16.mxu1 %v3001_v4  ;;  %2667 = vmatprep.mubr.msk.f32.mxu1 %vm3002_vm1, %v3003_v7 }
 0x485   : > { %2697 = vmatpush3.bf16.msra.mxu0 %v2696_v19 }
 0x486   : > { %2698 = vmatprep.subr.bf16.mxu0 %v3001_v4 }
 0x489   : > { %2700 = vmatpush3.bf16.msra.mxu0 %v2699_v46 }
 0x48a   : > { %2707 = vmatprep.subr.bf16.mxu0 %v3001_v4 }
 0x551   : > { %v1589_v20 = vpop.f32.mrb[2].mxu0  ;;  %v1662_v21 = vpop.f32.mrb[8].mxu1 }
 0x552   : > { %v2632_v22 = vpop.f32.mrb[3].mxu0  ;;  %v2637_v23 = vpop.f32.mrb[9].mxu1 }
 0x553   : > { %v2074_v22 = vld [vmem:[%s3288_s20 + $0x10] sm:$0xff]  ;;  %v2075_v23 = vld [vmem:[%s3288_s20 + $0x18] sm:$0xff] }
 0x555   : > { %v1735_v25 = vpop.f32.mrb[4].mxu0  ;;  %v1808_v26 = vpop.f32.mrb[10].mxu1 }
 0x556   : > { %v1812_v27 = vcombine.low %v1589_v20, %v1735_v25  ;;  %v1813_v28 = vcombine.high %v1589_v20, %v1735_v25  ;;  %v1828_v29 = vcombine.low %v1662_v21, %v1808_v26  ;;  %v1829_v30 = vcombine.high %v1662_v21, %v1808_v26  ;;  %v2642_v31 = vpop.f32.mrb[5].mxu0  ;;  %v2647_v33 = vpop.f32.mrb[11].mxu1  ;;  %v2073_v21 = vld [vmem:[%s3288_s20 + $0x8] sm:$0xff]  ;;  %v2157_v26 = vld [vmem:[%s3298_s26] sm:$0xff] }
 0x557   : > { %v2705_v25 = vpack.c.bf16 %v2075_v23, %v2074_v22  ;;  %v2161_v33 = vld [vmem:[%s3298_s26 + $0x20] sm:$0xff] }
 0x558   : > { %v1820_v34 = vrot.slane %v1812_v27, %v3347_v24  ;;  %v1827_v35 = vrot.slane %v1813_v28, %v3347_v24  ;;  %v1836_v36 = vrot.slane %v1828_v29, %v3347_v24  ;;  %v1843_v37 = vrot.slane %v1829_v30, %v3347_v24  ;;  %v2158_v27 = vld [vmem:[%s3298_s26 + $0x8] sm:$0xff]  ;;  %v2159_v28 = vld [vmem:[%s3298_s26 + $0x10] sm:$0xff]  ;;  %v2160_v30 = vld [vmem:[%s3298_s26 + $0x18] sm:$0xff] }
 0x559   : > { %v2708_v29 = vpack.c.bf16 %v2158_v27, %v2157_v26  ;;  %v2711_v31 = vpack.c.bf16 %v2160_v30, %v2159_v28 }
 0x55a   : > { %v1844_v38 = vcombine.low %v1820_v34, %v1836_v36  ;;  %v1845_v39 = vcombine.high %v1820_v34, %v1836_v36  ;;  %v1860_v14 = vcombine.low %v1827_v35, %v1843_v37  ;;  %v1861_v13 = vcombine.high %v1827_v35, %v1843_v37  ;;  %v2162_v34 = vld [vmem:[%s3298_s26 + $0x28] sm:$0xff] }
 0x55b   : > { %v2714_v35 = vpack.c.bf16 %v2162_v34, %v2161_v33 }
 0x55c   : > { %v1852_v42 = vrot.slane %v1844_v38, %v3357_v32  ;;  %v1859_v43 = vrot.slane %v1845_v39, %v3357_v32  ;;  %v1868_v44 = vrot.slane %v1860_v14, %v3357_v32  ;;  %v1875_v45 = vrot.slane %v1861_v13, %v3357_v32  ;;  %v2541_v14 = vld [vmem:[%s3677_s23] ss:$0 sm:$0xff]  ;;  %s3681_s23 = sld [smem:[#allocation29_spill]] }
 0x55e   : > { %v1880_v47 = vcombine.low %v1852_v42, %v1859_v43  ;;  %v2538_v48 = vcombine.high %v1852_v42, %v1859_v43  ;;  %v1896_v49 = vcombine.low %v1868_v44, %v1875_v45  ;;  %v2539_v50 = vcombine.high %v1868_v44, %v1875_v45  ;;  %v2163_v42 = vld [vmem:[%s3298_s26 + $0x30] sm:$0xff]  ;;  %v2164_v43 = vld [vmem:[%s3298_s26 + $0x38] sm:$0xff]  ;;  %v2543_v45 = vld [vmem:[%s627_s17] ss:$0 sm:$0xff]  ;;  %s3679_s17 = sld [smem:[#allocation23_spill]]  ;;  %s3680_s26 = sld [smem:[#allocation20_spill]] }
 0x55f   : > { %v2717_v44 = vpack.c.bf16 %v2164_v43, %v2163_v42 }
 0x560   : > { %v1887_v51 = vrot.slane %v1880_v47, %v3347_v24  ;;  %v1895_v52 = vrot.slane %v2538_v48, %v3347_v24  ;;  %v1903_v53 = vrot.slane %v1896_v49, %v3347_v24  ;;  %v1911_v54 = vrot.slane %v2539_v50, %v3347_v24  ;;  %v2545_v50 = vld [vmem:[%s635_s1] ss:$0 sm:$0xff] }
 0x562   : > { %v1913_v55 = vcombine.high %v1887_v51, %v1895_v52  ;;  %v1929_v56 = vcombine.high %v1903_v53, %v1911_v54  ;;  %v1912_v57 = vcombine.low %v1887_v51, %v1895_v52  ;;  %v1928_v58 = vcombine.low %v1903_v53, %v1911_v54  ;;  %s3682_s15 = smov %s3681_s23 }
 0x564   : > { %v1927_v59 = vrot.slane %v1913_v55, %v3357_v32  ;;  %v1943_v60 = vrot.slane %v1929_v56, %v3357_v32  ;;  %v1920_v61 = vrot.slane %v1912_v57, %v3357_v32  ;;  %v1936_v62 = vrot.slane %v1928_v58, %v3357_v32  ;;  %p3683_p3 = scmp.ne.s32.totalorder %s3680_s26, 0 }
 0x566   : > { %v1946_v63 = vcombine.low %v1927_v59, %v1943_v60  ;;  %v1945_v0 = vcombine.high %v1920_v61, %v1936_v62  ;;  %v1947_v1 = vcombine.high %v1927_v59, %v1943_v60  ;;  %v1944_v2 = vcombine.low %v1920_v61, %v1936_v62 }
 0x568   : > { %1953 = vrot.lane.b32.xlu0 %v1946_v63, %s3011_s0  ;;  %1949 = vrot.lane.b32.xlu1 %v1945_v0, %s3012_s16  ;;  %s2550_s16 = sshll.u32 %s2985_s25, 7 }
 0x569   : > { %s3553_s18 = scalar_lea.hbm %s3681_s23, %s2550_s16 }
 0x56c   : > { %1957 = vrot.lane.b32.xlu1 %v1947_v1, %s3013_s29  ;;  %v2547_v1 = vld [vmem:[%s638_s28] ss:$0 sm:$0xff]  ;;  %s2292_s29 = sshll.u32 %s603_s14, 4  ;;  %s2899_s28 = sshll.u32 %s3014_s30, 4  ;;  %s3555_s29 = int_to_ptr.vmem [resolvable:$true] %s2292_s29  ;;  %s2900_s28 = int_to_ptr.vmem [resolvable:$false] %s2899_s28 }
 0x56d   : > { %s2895_s25 = scalar_lea.vmem %s3555_s29, 128  ;;  %s2901_s13 = scalar_lea.vmem %s2900_s28, 256 }
 0x56e   : > { %p2896_p7 = scmp.ne.s32.totalorder %s3555_s29, %s2895_s25  ;;  %p2902_p1 = scmp.lt.s32.totalorder %s3555_s29, %s2900_s28 }
 0x56f   : > { %p2903_p2 = scmp.lt.s32.totalorder %s2901_s13, %s2895_s25 }
 0x570   : > { %p2897_p8 = pnand %p2896_p7, %p3683_p3 }
 0x571   : > { %p2904_p10 = por %p2903_p2, %p2902_p1 }
 0x572   : > { %p2898_p12 = pneg %p2897_p8 }
 0x574   : > { %p2905_p11 = pnand %p2904_p10, %p2898_p12 }
 0x5da   : > { %v1950_v24 = vpop.permute.xlu1 %1949  ;;  %v1954_v3 = vpop.permute.xlu0 %1953 }
 0x5db   : > { %v1960_v5 = vsel %vm1171_vm3, %v1944_v2, %v1950_v24  ;;  %v2548_v24 = vld [vmem:[%s641_s6] ss:$0 sm:$0xff]  ;;  %s2279_s6 = scalar_lea.sflag [#allocation5], %s3679_s17 }
 0x5dc   : > { %v1962_v8 = vsel %vm1961_vm4, %v1960_v5, %v1954_v3 }
 0x5de   : > { %v1958_v6 = vpop.permute.xlu1 %1957 }
 0x5df   : > { %v1964_v32 = vsel %vm1963_vm5, %v1962_v8, %v1958_v6 }
 0x5e0   : > { %2657 = vmatmul.mubr.msk.f32.vlgmr.msra.gmra.mrb[6].mxu0 %vm654_vm2, %v1964_v32 }
 0x5e1   : > { %2686 = vmatprep.mubr.msk.f32.mxu0 %vm3002_vm1, %v3003_v7  ;;  %v2072_v7 = vld [vmem:[%s3288_s20] sm:$0xff]  ;;  %2709 = vmatpush3.bf16.msra.mxu0 %v2708_v29 }
 0x5e2   : > { %2710 = vmatprep.subr.bf16.mxu0 %v3001_v4 }
 0x5e5   : > { %2712 = vmatpush3.bf16.msra.mxu0 %v2711_v31 }
 0x5e6   : > { %2713 = vmatprep.subr.bf16.mxu0 %v3001_v4 }
 0x5e9   : > { %2715 = vmatpush3.bf16.msra.mxu0 %v2714_v35 }
 0x5ea   : > { %2716 = vmatprep.subr.bf16.mxu0 %v3001_v4 }
 0x5ed   : > { %2718 = vmatpush3.bf16.msra.mxu0 %v2717_v44 }
 0x6b3   : > { %v2038_v11 = vpop.f32.mrb[6].mxu0 }
 0x6b4   : > { %v2039_v15 = vadd.f32 %v2038_v11, %v3321_v9  ;;  %v2658_v16 = vpop.f32.mrb[7].mxu0  ;;  %v2702_v9 = vpack.c.bf16 %v2073_v21, %v2072_v7 }
 0x6b6   : > { %v2044_v17 = vsel %vm654_vm2, %v2039_v15, 0.0  ;;  %2703 = vmatpush3.bf16.msra.mxu1 %v2702_v9 }
 0x6b7   : > { %2045 = vadd.xlane.f32.xlu0 %v2044_v17  ;;  %2704 = vmatprep.subr.bf16.mxu1 %v3001_v4 }
 0x6ba   : > { %2706 = vmatpush3.bf16.msra.mxu1 %v2705_v25 }
 0x744   : > { %v2046_v12 = vpop.xlane.xlu0 %2045 }
 0x745   : > { %v2048_v10 = vmul.f32 0.03125, %v2046_v12 }
 0x747   : > { %v2049_v18 = vsub.f32 %v2039_v15, %v2048_v10 }
 0x749   : > { %v2050_v19 = vmul.f32 %v2049_v18, %v2049_v18 }
 0x74b   : > { %v2051_v20 = vsel %vm654_vm2, %v2050_v19, 0.0 }
 0x74c   : > { %2052 = vadd.xlane.f32.xlu1 %v2051_v20 }
 0x7d9   : > { %v2053_v36 = vpop.xlane.xlu1 %2052 }
 0x7da   : > { %v2054_v37 = vmul.f32 0.03125, %v2053_v36 }
 0x7dc   : > { %v2055_v38 = vadd.f32 1e-12, %v2054_v37 }
 0x7de   : > { %2831 = vrsqrt.f32 %v2055_v38 }
 0x7e8   : > { %v2832_v39 = vpop.eup %2831 }
 0x7e9   : > { %v2057_v13 = vmul.f32 %v2832_v39, %v2049_v18 }
 0x7eb   : > { %v2064_v41 = vmul.f32 %v2541_v14, %v2057_v13 }
 0x7ed   : > { %v2071_v4 = vadd.f32 %v2542_v40, %v2064_v41 }
 0x7ef   : > { %2668 = vmatmul.mubr.msk.f32.vlgmr.msra.gmra.mrb[12].mxu1 %vm654_vm2, %v2071_v4 }
 0x8c2   : > { %v2152_v46 = vpop.f32.mrb[12].mxu1 }
 0x8c3   : > { %v2153_v47 = vadd.f32 %v2543_v45, %v2152_v46  ;;  %v2669_v48 = vpop.f32.mrb[13].mxu1 }
 0x8c5   : > { %v2156_v49 = vmax.f32 %v2153_v47, 0.0 }
 0x8c7   : > { %2687 = vmatmul.mubr.msk.f32.vlgmr.msra.gmra.mrb[8].mxu0 %vm2172_vm6, %v2156_v49 }
 0x99a   : > { %v2242_v51 = vpop.f32.mrb[8].mxu0 }
 0x99b   : > { %v2243_v52 = vadd.f32 %v2545_v50, %v2242_v51  ;;  %v2688_v53 = vpop.f32.mrb[9].mxu0 }
 0x99d   : > { %v2246_v54 = vadd.f32 %v2243_v52, %v2071_v4 }
 0x99f   : > { %v2249_v55 = vsel %vm654_vm2, %v2246_v54, 0.0 }
 0x9a0   : > { %2250 = vadd.xlane.f32.xlu0 %v2249_v55 }
 0xa2d   : > { %v2251_v56 = vpop.xlane.xlu0 %2250 }
 0xa2e   : > { %v2252_v57 = vmul.f32 0.03125, %v2251_v56 }
 0xa30   : > { %v2253_v58 = vsub.f32 %v2246_v54, %v2252_v57 }
 0xa32   : > { %v2254_v59 = vmul.f32 %v2253_v58, %v2253_v58 }
 0xa34   : > { %v2255_v60 = vsel %vm654_vm2, %v2254_v59, 0.0 }
 0xa35   : > { %2256 = vadd.xlane.f32.xlu0 %v2255_v60 }
 0xac2   : > { %v2257_v61 = vpop.xlane.xlu0 %2256 }
 0xac3   : > { %v2258_v62 = vmul.f32 0.03125, %v2257_v61 }
 0xac5   : > { %v2259_v63 = vadd.f32 1e-12, %v2258_v62 }
 0xac7   : > { %2833 = vrsqrt.f32 %v2259_v63 }
 0xad1   : > { %v2834_v0 = vpop.eup %2833 }
 0xad2   : > { %v2261_v2 = vmul.f32 %v2834_v0, %v2253_v58 }
 0xad4   : > { %v2268_v3 = vmul.f32 %v2547_v1, %v2261_v2 }
 0xad6   : > { %v2275_v5 = vadd.f32 %v2548_v24, %v2268_v3 }
 0xad8   : > { %2276 = vst.msk [vmem:[#allocation2] sm:$0xff] %vm654_vm2, %v2275_v5  ;;  %2277 = vst.msk [vmem:[%s603_s14] sm:$0xff] %vm654_vm2, %v2275_v5 }
 0xad9   : > { %2908 = shalt.err (!%p2905_p11)
}
 0xada   : > { %s2909_s12 = scalar_lea.hbm %s3553_s18, 128  ;;  %s2913_s3 = scalar_lea.hbm %s3682_s15, 256 }
 0xadb   : > { %p2910_p4 = scmp.ne.s32.totalorder %s3553_s18, %s2909_s12  ;;  %p2914_p9 = scmp.lt.u32.totalorder %s3553_s18, %s3682_s15 }
 0xadc   : > { %p2915_p0 = scmp.lt.u32.totalorder %s2913_s3, %s2909_s12  ;;  %p2917_p7 = scmp.lt.u32.totalorder %s2909_s12, %s3553_s18 }
 0xadd   : > { %p2911_p6 = pnand %p2910_p4, %p3683_p3 }
 0xade   : > { %p2916_p5 = por %p2915_p0, %p2914_p9 }
 0xadf   : > { %p2912_p13 = pneg %p2911_p6 }
 0xae0   : > { %p2918_p8 = por %p2917_p7, %p2916_p5 }
 0xae2   : > { %p2919_p12 = pnand %p2918_p8, %p2912_p13 }
 0xae4   : > { %2922 = shalt.err (!%p2919_p12)
}
 0xae5   : > { %2723 = dma.vmem_to_hbm [thread:$0]  (%p3683_p3), %s3555_s29, 128, %s3553_s18, %s2279_s6  }
 0xae6 PF: > { %s3684_s17 = sld [smem:[#allocation17_spill]]  ;;  %s3685_s1 = sld [smem:[#allocation12_spill]] }
 0xae7   : > { %s3686_s21 = sld [smem:[#allocation21_spill]] }
 0xaec   : > { %p2737_p1 = scmp.ge.s32.totalorder %s3684_s17, 2  ;;  %s2304_s27 = sand.u32 1, %s3685_s1  }
 0xaed   : > { %p3687_p2 = scmp.ne.s32.totalorder %s3686_s21, 0  ;;  %s2305_s0 = scalar_lea.sflag [#allocation5], %s2304_s27 }
 0xaef   : > { %p2733_p10 = pnand %p2737_p1, %p3687_p2 }
 0xaf1   : > { %2964 = dma.done.wait (!%p2733_p10), %s2305_s0, 128  }
 0xaf2   : > { %2966 = vsyncadd (!%p2733_p10), %s2305_s0, 4294967168  ;;  %s31_s28 = sadd.s32 1, %s3684_s17   ;;  %s3688_s21 = sld [smem:[#allocation13_spill]] }
 0xaf3   : > { %p28_p11 = scmp.ge.s32.totalorder %s31_s28, 6   ;;  %s3689_s22 = sld [smem:[#allocation14_spill]] }
 0xaf4   : > { %s3690_s23 = sld [smem:[#allocation22_spill]]  ;;  %s3691_s24 = sld [smem:[#allocation15_spill]] }
 0xaf5   : > { %s3692_s25 = sld [smem:[#allocation16_spill]]  ;;  %s3693_s26 = sld [smem:[#allocation18_spill]] }
 0xaf6   : > { %s3694_s27 = sld [smem:[#allocation19_spill]]  ;;  %30 = sbr.rel (!%p28_p11) target bundleno = 16 (0x10), region = 160 }
 0xafd   :  { %2310 = vsyncpa [#allocation4], 1 }
 0xafe   :  { %2312 = vsyncpa [#allocation4 + $0x1], 1 }
 0xaff   :  { %2313 = vsyncpa [#allocation7], 1 }
 0xb00   :  { %2315 = vsyncpa [#allocation7 + $0x1], 1 }
 0xb01   :  { %2316 = vsyncpa [#allocation5], 1 }
 0xb02   :  { %2318 = vsyncpa [#allocation5 + $0x1], 1 }

</bundles_post_ra>
